<compile_context>
chip_gen: v7x
topology: tpu7x:2x2x1
jax: 0.10.0
libtpu: 0.0.40
codegen_flags: <defaults>
</compile_context>

<pallas_src>
import functools

import jax
import jax.numpy as jnp
from jax.experimental import pallas as pl
from jax.experimental.pallas import tpu as pltpu


def _round_up(v, m):
    return (v + m - 1) // m * m


def _head_kernel(x_ref, w1_ref, b1_ref, w2_ref, b2_ref, cls_ref, pos_ref, *,
                 num_classes, num_pos):
    """One row-tile of tokens through both (fused) MLP heads (eval mode)."""
    x = x_ref[...]                                           # [tm, D] (f32 or bf16)

    # Fused first layer of both heads: [tm, D] @ [D, 2H] on the MXU, f32 accum.
    h = jnp.dot(x, w1_ref[...], preferred_element_type=jnp.float32)
    h = jnp.maximum(h + b1_ref[...], 0.0)                    # bias + ReLU (Dropout = id)

    # Fused block-diagonal second layer, computed transposed so the token dim is
    # the lane (last) dim:  z = W2^T @ h^T : [Cp, tm]  (lane-dense epilogue).
    z = jax.lax.dot_general(w2_ref[...], h, (((0,), (1,)), ((), ())),
                            preferred_element_type=jnp.float32)
    z = z + b2_ref[...]                                      # b2: [Cp, 1]

    # Static split: class rows are raw logits, position rows get the sigmoid.
    cls_ref[...] = z[:num_classes, :]
    pos_ref[...] = jax.nn.sigmoid(z[num_classes:num_classes + num_pos, :])


@functools.partial(jax.jit, static_argnames=("tm", "use_bf16"))
def defect_detection_head(x, params, *, tm=8192, use_bf16=True):
    """x: [B, S, d_model]. Returns (class_logits [B,S,C], position_pred [B,S,2])."""
    B, S, D = x.shape
    N = B * S
    x2 = x.reshape(N, D)

    w1c, b1c, w2c, b2c = params["w1c"], params["b1c"], params["w2c"], params["b2c"]
    w1p, b1p, w2p, b2p = params["w1p"], params["b1p"], params["w2p"], params["b2p"]
    H = w1c.shape[1]              # d_model // 2
    C = w2c.shape[1]              # num_classes
    P = w2p.shape[1]              # 2 (start, end)
    CP = C + P
    CPp = _round_up(CP, 8)        # pad matmul output rows to a full sublane tile

    # ---- fuse both heads' weights (tiny, done once per call under jit) ----
    w1 = jnp.concatenate([w1c, w1p], axis=1)                  # [D, 2H]
    b1 = jnp.concatenate([b1c, b1p], axis=1)                  # [1, 2H]
    w2 = jnp.zeros((2 * H, CPp), jnp.float32)                 # block-diag [2H, Cp]
    w2 = w2.at[:H, :C].set(w2c).at[H:, C:CP].set(w2p)
    b2 = jnp.zeros((CPp, 1), jnp.float32)                     # [Cp, 1] (transposed)
    b2 = b2.at[:CP, :].set(jnp.concatenate([b2c, b2p], axis=1).T)

    if use_bf16:                  # halves the dominant x HBM stream; f32 accum kept
        x2 = x2.astype(jnp.bfloat16)
        w1 = w1.astype(jnp.bfloat16)

    # Row tile: big enough to amortize per-step overhead; for small N split into
    # >=2 balanced 128-aligned blocks so "parallel" can use both v7x TensorCores.
    assert tm % 128 == 0
    if N > tm:
        tm_eff = tm
    else:
        half = _round_up(pl.cdiv(N, 2), 128)
        tm_eff = half if half < N else N
    grid = (pl.cdiv(N, tm_eff),)                               # partial last block masked

    kernel = functools.partial(_head_kernel, num_classes=C, num_pos=P)

    out_cls, out_pos = pl.pallas_call(
        kernel,
        out_shape=(jax.ShapeDtypeStruct((C, N), jnp.float32),
                   jax.ShapeDtypeStruct((P, N), jnp.float32)),
        grid_spec=pltpu.PrefetchScalarGridSpec(
            num_scalar_prefetch=0,
            grid=grid,
            in_specs=[
                pl.BlockSpec((tm_eff, D), lambda i: (i, 0)),   # x streams over rows
                pl.BlockSpec((D, 2 * H), lambda i: (0, 0)),    # fused W1 (resident)
                pl.BlockSpec((1, 2 * H), lambda i: (0, 0)),    # fused b1 (resident)
                pl.BlockSpec((2 * H, CPp), lambda i: (0, 0)),  # block-diag W2 (resident)
                pl.BlockSpec((CPp, 1), lambda i: (0, 0)),      # b2, transposed (resident)
            ],
            out_specs=[
                pl.BlockSpec((C, tm_eff), lambda i: (0, i)),   # lane-dense class logits
                pl.BlockSpec((P, tm_eff), lambda i: (0, i)),   # lane-dense positions
            ],
        ),
        compiler_params=pltpu.CompilerParams(
            dimension_semantics=("parallel",)),
    )(x2, w1, b1, w2, b2)

    # Tiny (4 x N) transposes in the wrapper; negligible vs. the x stream.
    class_logits = out_cls.T.reshape(B, S, C)
    position_pred = out_pos.T.reshape(B, S, P)
    return class_logits, position_pred


def init_params(key, d_model=128, num_classes=2):
    """Deterministic synthetic parameters (shapes match the PyTorch module)."""
    h = d_model // 2
    ks = jax.random.split(key, 8)
    sc1 = 1.0 / jnp.sqrt(d_model)
    sc2 = 1.0 / jnp.sqrt(h)
    return {
        # class head
        "w1c": jax.random.uniform(ks[0], (d_model, h), jnp.float32, -sc1, sc1),
        "b1c": jax.random.uniform(ks[1], (1, h), jnp.float32, -sc1, sc1),
        "w2c": jax.random.uniform(ks[2], (h, num_classes), jnp.float32, -sc2, sc2),
        "b2c": jax.random.uniform(ks[3], (1, num_classes), jnp.float32, -sc2, sc2),
        # position head
        "w1p": jax.random.uniform(ks[4], (d_model, h), jnp.float32, -sc1, sc1),
        "b1p": jax.random.uniform(ks[5], (1, h), jnp.float32, -sc1, sc1),
        "w2p": jax.random.uniform(ks[6], (h, 2), jnp.float32, -sc2, sc2),
        "b2p": jax.random.uniform(ks[7], (1, 2), jnp.float32, -sc2, sc2),
    }


def _reference(x, p):
    """Pure-JAX reference of the PyTorch forward (eval mode)."""
    h_c = jnp.maximum(x @ p["w1c"] + p["b1c"][0], 0.0)
    cls = h_c @ p["w2c"] + p["b2c"][0]
    h_p = jnp.maximum(x @ p["w1p"] + p["b1p"][0], 0.0)
    pos = jax.nn.sigmoid(h_p @ p["w2p"] + p["b2p"][0])
    return cls, pos


if __name__ == "__main__":
    key = jax.random.PRNGKey(0)
    k_x, k_p = jax.random.split(key)

    B, S, d_model, num_classes = 2, 8, 128, 2
    x = jax.random.normal(k_x, (B, S, d_model), jnp.float32)
    params = init_params(k_p, d_model=d_model, num_classes=num_classes)

    ref_cls, ref_pos = _reference(x, params)

    # f32 path (exact vs reference).
    class_logits, position_pred = defect_detection_head(x, params, use_bf16=False)
    jax.block_until_ready((class_logits, position_pred))
    assert class_logits.shape == (B, S, num_classes)
    assert position_pred.shape == (B, S, 2)
    assert jnp.allclose(class_logits, ref_cls, atol=1e-5, rtol=1e-5)
    assert jnp.allclose(position_pred, ref_pos, atol=1e-5, rtol=1e-5)

    # Default bf16-x path (halved HBM read; f32 accumulation): looser tolerance.
    cls_bf, pos_bf = defect_detection_head(x, params)
    jax.block_until_ready((cls_bf, pos_bf))
    assert cls_bf.shape == (B, S, num_classes)
    assert pos_bf.shape == (B, S, 2)
    assert jnp.allclose(cls_bf, ref_cls, atol=5e-2, rtol=5e-2)
    assert jnp.allclose(pos_bf, ref_pos, atol=5e-2, rtol=5e-2)

    print("KERNEL_OK")
</pallas_src>

<mosaic_0001>
module attributes {stable_mosaic.version = 11 : i64} {
  func.func @_head_kernel(%arg0: i32, %arg1: memref<16x128xf32, #tpu.memory_space<vmem>>, %arg2: memref<128x128xf32, #tpu.memory_space<vmem>>, %arg3: memref<1x128xf32, #tpu.memory_space<vmem>>, %arg4: memref<128x8xf32, #tpu.memory_space<vmem>>, %arg5: memref<8x1xf32, #tpu.memory_space<vmem>>, %arg6: memref<2x16xf32, #tpu.memory_space<vmem>>, %arg7: memref<2x16xf32, #tpu.memory_space<vmem>>) attributes {dimension_semantics = [#tpu.dimension_semantics<parallel>], iteration_bounds = array<i64: 1>, scalar_prefetch = 0 : i64, scratch_operands = 0 : i64, tpu.core_type = #tpu.core_type<tc>, window_params = [{transform_indices = @transform_0, window_bounds = array<i64: 16, 128>}, {pipeline_mode = #tpu.pipeline_mode<synchronous>, transform_indices = @transform_1, window_bounds = array<i64: 128, 128>}, {pipeline_mode = #tpu.pipeline_mode<synchronous>, transform_indices = @transform_2, window_bounds = array<i64: 1, 128>}, {pipeline_mode = #tpu.pipeline_mode<synchronous>, transform_indices = @transform_3, window_bounds = array<i64: 128, 8>}, {pipeline_mode = #tpu.pipeline_mode<synchronous>, transform_indices = @transform_4, window_bounds = array<i64: 8, 1>}, {transform_indices = @transform_5, window_bounds = array<i64: 2, 16>}, {transform_indices = @transform_6, window_bounds = array<i64: 2, 16>}]} {
    %c0 = arith.constant 0 : index
    %c0_0 = arith.constant 0 : index
    %0 = vector.load %arg1[%c0, %c0_0] : memref<16x128xf32, #tpu.memory_space<vmem>>, vector<16x128xf32>
    %c0_1 = arith.constant 0 : index
    %c0_2 = arith.constant 0 : index
    %1 = vector.load %arg2[%c0_1, %c0_2] : memref<128x128xf32, #tpu.memory_space<vmem>>, vector<128x128xf32>
    %cst = arith.constant dense<0.000000e+00> : vector<16x128xf32>
    %2 = tpu.matmul %0, %1, %cst {dimension_numbers = #tpu.dot_dimension_numbers<[1], [0], [0], [1], [0, 0, 1, 1], [], []>} : vector<16x128xf32>, vector<128x128xf32>, vector<16x128xf32> -> vector<16x128xf32>
    %c0_3 = arith.constant 0 : index
    %c0_4 = arith.constant 0 : index
    %3 = vector.load %arg3[%c0_3, %c0_4] : memref<1x128xf32, #tpu.memory_space<vmem>>, vector<1x128xf32>
    %4 = vector.broadcast %3 : vector<1x128xf32> to vector<16x128xf32>
    %5 = arith.addf %2, %4 : vector<16x128xf32>
    %cst_5 = arith.constant 0.000000e+00 : f32
    %6 = vector.broadcast %cst_5 : f32 to vector<16x128xf32>
    %7 = arith.maximumf %5, %6 : vector<16x128xf32>
    %c0_6 = arith.constant 0 : index
    %c0_7 = arith.constant 0 : index
    %8 = vector.load %arg4[%c0_6, %c0_7] : memref<128x8xf32, #tpu.memory_space<vmem>>, vector<128x8xf32>
    %cst_8 = arith.constant dense<0.000000e+00> : vector<8x16xf32>
    %9 = tpu.matmul %8, %7, %cst_8 {dimension_numbers = #tpu.dot_dimension_numbers<[0], [1], [1], [0], [0, 1, 1, 0], [], []>} : vector<128x8xf32>, vector<16x128xf32>, vector<8x16xf32> -> vector<8x16xf32>
    %c0_9 = arith.constant 0 : index
    %c0_10 = arith.constant 0 : index
    %10 = vector.load %arg5[%c0_9, %c0_10] : memref<8x1xf32, #tpu.memory_space<vmem>>, vector<8x1xf32>
    %11 = vector.broadcast %10 : vector<8x1xf32> to vector<8x16xf32>
    %12 = arith.addf %9, %11 : vector<8x16xf32>
    %13 = vector.extract_strided_slice %12 {offsets = [0, 0], sizes = [2, 16], strides = [1, 1]} : vector<8x16xf32> to vector<2x16xf32>
    %c0_11 = arith.constant 0 : index
    %c0_12 = arith.constant 0 : index
    %14 = vector.load %arg6[%c0_11, %c0_12] : memref<2x16xf32, #tpu.memory_space<vmem>>, vector<2x16xf32>
    tpu.vector_store %arg6[%c0_11, %c0_12], %13 {strides = array<i32>} : memref<2x16xf32, #tpu.memory_space<vmem>>, vector<2x16xf32>,
    %15 = vector.extract_strided_slice %12 {offsets = [2, 0], sizes = [2, 16], strides = [1, 1]} : vector<8x16xf32> to vector<2x16xf32>
    %16 = arith.negf %15 : vector<2x16xf32>
    %17 = math.exp %16 : vector<2x16xf32>
    %cst_13 = arith.constant 1.000000e+00 : f32
    %18 = vector.broadcast %cst_13 : f32 to vector<2x16xf32>
    %19 = arith.addf %18, %17 : vector<2x16xf32>
    %20 = arith.divf %18, %19 : vector<2x16xf32>
    %c0_14 = arith.constant 0 : index
    %c0_15 = arith.constant 0 : index
    %21 = vector.load %arg7[%c0_14, %c0_15] : memref<2x16xf32, #tpu.memory_space<vmem>>, vector<2x16xf32>
    tpu.vector_store %arg7[%c0_14, %c0_15], %20 {strides = array<i32>} : memref<2x16xf32, #tpu.memory_space<vmem>>, vector<2x16xf32>,
    return
  }
  func.func @transform_0(%arg0: i32) -> (i32, i32) {
    %c0_i32 = arith.constant 0 : i32
    %c0_i32_0 = arith.constant 0 : i32
    return %arg0, %c0_i32 : i32, i32
  }
  func.func @transform_1(%arg0: i32) -> (i32, i32) {
    %c0_i32 = arith.constant 0 : i32
    %c0_i32_0 = arith.constant 0 : i32
    %c0_i32_1 = arith.constant 0 : i32
    return %c0_i32, %c0_i32_0 : i32, i32
  }
  func.func @transform_2(%arg0: i32) -> (i32, i32) {
    %c0_i32 = arith.constant 0 : i32
    %c0_i32_0 = arith.constant 0 : i32
    %c0_i32_1 = arith.constant 0 : i32
    return %c0_i32, %c0_i32_0 : i32, i32
  }
  func.func @transform_3(%arg0: i32) -> (i32, i32) {
    %c0_i32 = arith.constant 0 : i32
    %c0_i32_0 = arith.constant 0 : i32
    %c0_i32_1 = arith.constant 0 : i32
    return %c0_i32, %c0_i32_0 : i32, i32
  }
  func.func @transform_4(%arg0: i32) -> (i32, i32) {
    %c0_i32 = arith.constant 0 : i32
    %c0_i32_0 = arith.constant 0 : i32
    %c0_i32_1 = arith.constant 0 : i32
    return %c0_i32, %c0_i32_0 : i32, i32
  }
  func.func @transform_5(%arg0: i32) -> (i32, i32) {
    %c0_i32 = arith.constant 0 : i32
    %c0_i32_0 = arith.constant 0 : i32
    return %c0_i32, %arg0 : i32, i32
  }
  func.func @transform_6(%arg0: i32) -> (i32, i32) {
    %c0_i32 = arith.constant 0 : i32
    %c0_i32_0 = arith.constant 0 : i32
    return %c0_i32, %arg0 : i32, i32
  }
}

</mosaic_0001>

<bundles_post_ra>
// kernel: defect_detection_head.1
= control target key start
LH: loop header
LB: loop body
LE: loop exit
PB: predicated region body
PF: predicated region fallthrough
CT: control target
= control target key end

     0   :  { %v376_v42 = vmov 0.0|0.0   ;;  %vm377_vm0 = vmmov 0   ;;  %v378_v43 = vmov 0.0   ;;  %v379_v44 = vmov 0   ;;  %s529_s1 = inlined_call_operand.vmem [shape: f32[128,128], index: 1, kind: input, shape index: {}]   ;;  %s530_s0 = inlined_call_operand.vmem [shape: f32[16,128], index: 0, kind: input, shape index: {}]   ;;  %s531_s3 = inlined_call_operand.vmem [shape: f32[128,8], index: 3, kind: input, shape index: {}]   ;;  %s532_s4 = inlined_call_operand.vmem [shape: f32[8,1], index: 4, kind: input, shape index: {}]   ;;  %s533_s2 = inlined_call_operand.vmem [shape: f32[1,128], index: 2, kind: input, shape index: {}]   ;;  %s534_s5 = inlined_call_operand.vmem [shape: f32[2,16], index: 5, kind: output, shape index: {0}]   ;;  %s535_s6 = inlined_call_operand.vmem [shape: f32[2,16], index: 6, kind: output, shape index: {1}]  }
   0x1   :  { %v24_v0 = vld [vmem:[%s529_s1] sm:$0xff]  ;;  %v25_v1 = vld [vmem:[%s529_s1 + $0x8] sm:$0xff]  ;;  %v26_v2 = vld [vmem:[%s529_s1 + $0x10] sm:$0xff]  ;;  %363 = vmatprep.subr.bf16.mxu1 %v376_v42  ;;  %328 = vmatprep.mubr.msk.f32.mxu1 %vm377_vm0, %v378_v43  ;;  %vm248_vm1 = vcmask 123904   ;;  %vm256_vm2 = vcmask 125954  }
   0x2   :  { %v331_v3 = vpack.c.bf16 %v25_v1, %v24_v0  ;;  %v27_v4 = vld [vmem:[%s529_s1 + $0x18] sm:$0xff]  ;;  %v28_v6 = vld [vmem:[%s529_s1 + $0x20] sm:$0xff]  ;;  %v29_v7 = vld [vmem:[%s529_s1 + $0x28] sm:$0xff]  ;;  %370 = vset.pattern.permute.xlu1 %v379_v44 }
   0x3   :  { %v335_v5 = vpack.c.bf16 %v27_v4, %v26_v2  ;;  %v339_v8 = vpack.c.bf16 %v29_v7, %v28_v6  ;;  %v22_v9 = vld [vmem:[%s530_s0] sm:$0xff]  ;;  %v30_v10 = vld [vmem:[%s529_s1 + $0x30] sm:$0xff]  ;;  %v31_v11 = vld [vmem:[%s529_s1 + $0x38] sm:$0xff] }
   0x4   :  { %332 = vmatprep.subr.bf16.mxu0 %v331_v3  ;;  %321 = vmatprep.mubr.f32.mxu0 %v22_v9  ;;  %v124_v12 = vld [vmem:[%s531_s3] sm:$0xff]  ;;  %v125_v13 = vld [vmem:[%s531_s3 + $0x8] sm:$0xff]  ;;  %v343_v14 = vpack.c.bf16 %v31_v11, %v30_v10  ;;  %v126_v17 = vld [vmem:[%s531_s3 + $0x10] sm:$0xff] }
   0x5   :  { %334 = vmatpush3.bf16.msra.mxu0 %v331_v3  ;;  %146 = vxpose.xlu0.b32.start [1/16] (narrow) %v124_v12, 8  ;;  %v32_v15 = vld [vmem:[%s529_s1 + $0x40] sm:$0xff]  ;;  %v33_v16 = vld [vmem:[%s529_s1 + $0x48] sm:$0xff]  ;;  %v34_v19 = vld [vmem:[%s529_s1 + $0x50] sm:$0xff] }
   0x6   :  { %336 = vmatprep.subr.bf16.mxu0 %v335_v5  ;;  %v347_v18 = vpack.c.bf16 %v33_v16, %v32_v15  ;;  %v35_v20 = vld [vmem:[%s529_s1 + $0x58] sm:$0xff]  ;;  %v36_v23 = vld [vmem:[%s529_s1 + $0x60] sm:$0xff]  ;;  %v37_v24 = vld [vmem:[%s529_s1 + $0x68] sm:$0xff] }
   0x7   :  { %v127_v21 = vld [vmem:[%s531_s3 + $0x18] sm:$0xff]  ;;  %v351_v22 = vpack.c.bf16 %v35_v20, %v34_v19  ;;  %v128_v25 = vld [vmem:[%s531_s3 + $0x20] sm:$0xff]  ;;  %v355_v26 = vpack.c.bf16 %v37_v24, %v36_v23  ;;  %v38_v27 = vld [vmem:[%s529_s1 + $0x70] sm:$0xff] }
   0x8   :  { %v39_v28 = vld [vmem:[%s529_s1 + $0x78] sm:$0xff]  ;;  %v129_v29 = vld [vmem:[%s531_s3 + $0x28] sm:$0xff]  ;;  %v130_v31 = vld [vmem:[%s531_s3 + $0x30] sm:$0xff] }
   0x9   :  { %338 = vmatpush3.bf16.msra.mxu0 %v335_v5  ;;  %147 = vxpose.xlu0.b32.cont [2/16] (narrow) %v125_v13, 8  ;;  %v359_v30 = vpack.c.bf16 %v39_v28, %v38_v27  ;;  %v23_v32 = vld [vmem:[%s530_s0 + $0x8] sm:$0xff]  ;;  %v131_v33 = vld [vmem:[%s531_s3 + $0x38] sm:$0xff]  ;;  %v132_v34 = vld [vmem:[%s531_s3 + $0x40] sm:$0xff] }
   0xa   :  { %340 = vmatprep.subr.bf16.mxu0 %v339_v8  ;;  %v133_v35 = vld [vmem:[%s531_s3 + $0x48] sm:$0xff]  ;;  %v134_v36 = vld [vmem:[%s531_s3 + $0x50] sm:$0xff]  ;;  %v135_v37 = vld [vmem:[%s531_s3 + $0x58] sm:$0xff] }
   0xb   :  { %v136_v38 = vld [vmem:[%s531_s3 + $0x60] sm:$0xff]  ;;  %v137_v39 = vld [vmem:[%s531_s3 + $0x68] sm:$0xff]  ;;  %v138_v40 = vld [vmem:[%s531_s3 + $0x70] sm:$0xff] }
   0xc   :  { %v139_v41 = vld [vmem:[%s531_s3 + $0x78] sm:$0xff]  ;;  %v140_v45 = vld [vmem:[%s532_s4] sm:$0xff] }
   0xd   :  { %342 = vmatpush3.bf16.msra.mxu0 %v339_v8  ;;  %148 = vxpose.xlu0.b32.cont [3/16] (narrow) %v126_v17, 8  ;;  %v266_v46 = vld [vmem:[%s533_s2] ss:$0 sm:$0xff] }
   0xe   :  { %344 = vmatprep.subr.bf16.mxu0 %v343_v14  ;;  %143 = vperm.xlu1 %370, %v140_v45  }
  0x11   :  { %346 = vmatpush3.bf16.msra.mxu0 %v343_v14  ;;  %149 = vxpose.xlu0.b32.cont [4/16] (narrow) %v127_v21, 8 }
  0x12   :  { %348 = vmatprep.subr.bf16.mxu0 %v347_v18 }
  0x15   :  { %350 = vmatpush3.bf16.msra.mxu0 %v347_v18  ;;  %150 = vxpose.xlu0.b32.cont [5/16] (narrow) %v128_v25, 8 }
  0x16   :  { %352 = vmatprep.subr.bf16.mxu0 %v351_v22 }
  0x19   :  { %354 = vmatpush3.bf16.msra.mxu0 %v351_v22  ;;  %151 = vxpose.xlu0.b32.cont [6/16] (narrow) %v129_v29, 8 }
  0x1a   :  { %356 = vmatprep.subr.bf16.mxu0 %v355_v26 }
  0x1d   :  { %358 = vmatpush3.bf16.msra.mxu0 %v355_v26  ;;  %152 = vxpose.xlu0.b32.cont [7/16] (narrow) %v130_v31, 8 }
  0x1e   :  { %360 = vmatprep.subr.bf16.mxu0 %v359_v30 }
  0x21   :  { %362 = vmatpush3.bf16.msra.mxu0 %v359_v30  ;;  %153 = vxpose.xlu0.b32.cont [8/16] (narrow) %v131_v33, 8 }
  0x24   :  { %322 = vmatmul.mubr.f32.vlgmr.msra.gmra.mrb[0].mxu0 %v23_v32 }
  0x25   :  { %154 = vxpose.xlu0.b32.cont [9/16] (narrow) %v132_v34, 8 }
  0x29   :  { %155 = vxpose.xlu0.b32.cont [10/16] (narrow) %v133_v35, 8 }
  0x2d   :  { %156 = vxpose.xlu0.b32.cont [11/16] (narrow) %v134_v36, 8 }
  0x31   :  { %157 = vxpose.xlu0.b32.cont [12/16] (narrow) %v135_v37, 8 }
  0x35   :  { %158 = vxpose.xlu0.b32.cont [13/16] (narrow) %v136_v38, 8 }
  0x39   :  { %159 = vxpose.xlu0.b32.cont [14/16] (narrow) %v137_v39, 8 }
  0x3d   :  { %160 = vxpose.xlu0.b32.cont [15/16] (narrow) %v138_v40, 8 }
  0x41   :  { %161 = vxpose.xlu0.b32.end [16/16] (narrow) %v139_v41, 8 }
  0x6a   :  { %371 = vset.pattern.permute.xlu0 %v379_v44 }
  0x85   :  { %v162_v54 = vpop.trf.xlu0 }
  0x8d   :  { %v144_v55 = vpop.permute.xlu1 %143 }
  0xf7   :  { %v323_v47 = vpop.f32.mrb[0].mxu0 }
  0xf8   :  { %v119_v48 = vadd.f32 %v323_v47, %v266_v46  ;;  %v113_v49 = vpop.f32.mrb[1].mxu0 }
  0xf9   :  { %v114_v50 = vadd.f32 %v266_v46, %v113_v49 }
  0xfa   :  { %v123_v51 = vmax.f32 %v119_v48, 0.0 }
  0xfb   :  { %v122_v52 = vmax.f32 %v114_v50, 0.0 }
  0xfd   :  { %v364_v53 = vpack.c.bf16 %v123_v51, %v122_v52 }
  0xff   :  { %365 = vmatpush3.bf16.xpose.msra.mxu1 %v364_v53 }
 0x106   :  { %329 = vmatmul.mubr.f32.vlgmr.msra.gmra.mrb[0].mxu1 %v162_v54 }
 0x1d9   :  { %v244_v56 = vpop.f32.mrb[0].mxu1 }
 0x1da   :  { %v245_v57 = vadd.f32 %v244_v56, %v144_v55  ;;  %v330_v58 = vpop.f32.mrb[1].mxu1 }
 0x1dc   :  { %249 = vst.msk [vmem:[%s534_s5] sm:$0x3] %vm248_vm1, %v245_v57  ;;  %v267_v59 = vmul.f32 -1.442695, %v245_v57 }
 0x1de   :  { %372 = vpow2.f32 %v267_v59 }
 0x1e8   :  { %v373_v60 = vpop.eup %372 }
 0x1e9   :  { %v253_v61 = vadd.f32 1.0, %v373_v60 }
 0x1eb   :  { %374 = vrcp.f32 %v253_v61 }
 0x1f5   :  { %v375_v62 = vpop.eup %374 }
 0x1f6   :  { %257 = vst.msk [vmem:[%s535_s6 - $0x2] sm:$0xc] %vm256_vm2, %v375_v62 }

</bundles_post_ra>
